<compile_context>
chip_gen: v5e
topology: v5e:2x2
jax: 0.10.0
libtpu: 0.0.40
codegen_flags: <defaults>
</compile_context>

<pallas_src>
import functools

import jax
import jax.numpy as jnp
from jax.experimental import pallas as pl
from jax.experimental.pallas import tpu as pltpu


def _chebynet_kernel(x_ref, l_ref, m_ref, w_ref, o_ref, *, K):
    """Per-batch Chebynet forward (one grid step = one batch element).

    x_ref: (N, Fin)            this batch's node features
    l_ref: (N, N)              L            (VMEM-resident, constant index_map)
    m_ref: (N, N)              M = 2L - I   (VMEM-resident, constant index_map)
    w_ref: (K-1, Fin, Fout)    weights of Chebyshev orders 1..K-1
    o_ref: (N, Fout)
    """
    x = x_ref[...]

    # Order 0 is T0 = zeros and GraphConvolution has no bias -> contributes
    # nothing; start directly at order 1:  S_1 = L @ x.
    s = jnp.dot(l_ref[...], x, preferred_element_type=jnp.float32)
    acc = jnp.dot(s, w_ref[0], preferred_element_type=jnp.float32)

    # Orders 2..K-1:  S_k = (2L - I) @ S_{k-1} = M @ S_{k-1};  acc += S_k @ W_k.
    if K > 2:
        m = m_ref[...]
        for k in range(2, K):
            s = jnp.dot(m, s, preferred_element_type=jnp.float32)
            acc = acc + jnp.dot(s, w_ref[k - 1], preferred_element_type=jnp.float32)

    o_ref[...] = jnp.maximum(acc, 0.0).astype(o_ref.dtype)  # ReLU


def chebynet_forward(x, L, W):
    """x: (B, N, Fin) f32, L: (N, N) f32, W: (K, Fin, Fout) f32 -> (B, N, Fout)."""
    B, N, Fin = x.shape
    K, _, Fout = W.shape

    if K < 2:
        # Only order 0 (zero adjacency, no bias) -> relu(0) = 0.
        return jnp.zeros((B, N, Fout), dtype=x.dtype)

    # Precompute M = 2L - I once (exact power-of-two scale, review item 3).
    M = 2.0 * L - jnp.eye(N, dtype=L.dtype)
    Wk = W[1:]  # (K-1, Fin, Fout): orders 1..K-1

    kernel = functools.partial(_chebynet_kernel, K=K)
    out = pl.pallas_call(
        kernel,
        grid=(B,),
        in_specs=[
            # Per-batch node features: batch dim squeezed out of the kernel ref.
            pl.BlockSpec((None, N, Fin), lambda b: (b, 0, 0)),
            # L, M, W: constant index maps -> DMA'd once, VMEM-resident.
            pl.BlockSpec((N, N), lambda b: (0, 0)),
            pl.BlockSpec((N, N), lambda b: (0, 0)),
            pl.BlockSpec((K - 1, Fin, Fout), lambda b: (0, 0, 0)),
        ],
        out_specs=pl.BlockSpec((None, N, Fout), lambda b: (b, 0, 0)),
        out_shape=jax.ShapeDtypeStruct((B, N, Fout), x.dtype),
        compiler_params=pltpu.CompilerParams(
            # Batch elements are independent: shard across v7x's 2 TensorCores;
            # no-op on single-TC v5e/v6e.
            dimension_semantics=("parallel",),
            # Explicit scoped-VMEM budget, sized for v7x's 64 MiB physical VMEM
            # (buffers here are a few KiB each, so this is generous headroom).
            vmem_limit_bytes=32 * 1024 * 1024,
        ),
    )(x, L, M, Wk)
    return out


def chebynet_reference(x, L, W):
    """Pure-JAX reference mirroring the PyTorch forward exactly."""
    K = W.shape[0]
    N = L.shape[0]
    support = []
    for k in range(K):
        if k == 0:
            support.append(jnp.zeros((N, N), dtype=L.dtype))
        elif k == 1:
            support.append(L)
        else:
            support.append(jnp.matmul(2.0 * L, support[k - 1]) - support[k - 1])
    result = None
    for k in range(K):
        out = jnp.matmul(jnp.matmul(support[k], x), W[k])
        result = out if result is None else result + out
    return jax.nn.relu(result)


def xavier_normal(key, shape):
    fan_in, fan_out = shape[-2], shape[-1]
    std = (2.0 / (fan_in + fan_out)) ** 0.5
    return std * jax.random.normal(key, shape, dtype=jnp.float32)


if __name__ == "__main__":
    # Small shapes consistent with the module: x = (B, N, Fin), K Cheby orders.
    B, N, Fin, Fout, K = 2, 8, 16, 32, 3

    key = jax.random.PRNGKey(0)
    kx, kl, kw = jax.random.split(key, 3)

    x = jax.random.normal(kx, (B, N, Fin), dtype=jnp.float32)
    L = jax.random.normal(kl, (N, N), dtype=jnp.float32)
    # One xavier-normal-initialized (Fin, Fout) weight per GraphConvolution.
    W = jnp.stack([xavier_normal(k, (Fin, Fout))
                   for k in jax.random.split(kw, K)], axis=0)

    out = chebynet_forward(x, L, W)
    out = jax.block_until_ready(out)

    ref = chebynet_reference(x, L, W)
    assert out.shape == (B, N, Fout)
    assert jnp.allclose(out, ref, atol=1e-4, rtol=1e-4), "mismatch vs reference"

    print("KERNEL_OK")
</pallas_src>

<mosaic_0001>
module attributes {stable_mosaic.version = 11 : i64} {
  func.func @_chebynet_kernel(%arg0: i32, %arg1: memref<1x8x16xf32, #tpu.memory_space<vmem>>, %arg2: memref<8x8xf32, #tpu.memory_space<vmem>>, %arg3: memref<8x8xf32, #tpu.memory_space<vmem>>, %arg4: memref<2x16x32xf32, #tpu.memory_space<vmem>>, %arg5: memref<1x8x32xf32, #tpu.memory_space<vmem>>) attributes {dimension_semantics = [#tpu.dimension_semantics<parallel>], iteration_bounds = array<i64: 2>, scalar_prefetch = 0 : i64, scratch_operands = 0 : i64, tpu.core_type = #tpu.core_type<tc>, window_params = [{transform_indices = @transform_0, window_bounds = array<i64: 1, 8, 16>}, {pipeline_mode = #tpu.pipeline_mode<synchronous>, transform_indices = @transform_1, window_bounds = array<i64: 8, 8>}, {pipeline_mode = #tpu.pipeline_mode<synchronous>, transform_indices = @transform_2, window_bounds = array<i64: 8, 8>}, {pipeline_mode = #tpu.pipeline_mode<synchronous>, transform_indices = @transform_3, window_bounds = array<i64: 2, 16, 32>}, {transform_indices = @transform_4, window_bounds = array<i64: 1, 8, 32>}]} {
    %c0 = arith.constant 0 : index
    %c0_0 = arith.constant 0 : index
    %c0_1 = arith.constant 0 : index
    %0 = vector.load %arg1[%c0, %c0_0, %c0_1] : memref<1x8x16xf32, #tpu.memory_space<vmem>>, vector<1x8x16xf32>
    %1 = vector.shape_cast %0 : vector<1x8x16xf32> to vector<8x16xf32>
    %c0_2 = arith.constant 0 : index
    %c0_3 = arith.constant 0 : index
    %2 = vector.load %arg2[%c0_2, %c0_3] : memref<8x8xf32, #tpu.memory_space<vmem>>, vector<8x8xf32>
    %cst = arith.constant dense<0.000000e+00> : vector<8x16xf32>
    %3 = tpu.matmul %2, %1, %cst {dimension_numbers = #tpu.dot_dimension_numbers<[1], [0], [0], [1], [0, 0, 1, 1], [], []>} : vector<8x8xf32>, vector<8x16xf32>, vector<8x16xf32> -> vector<8x16xf32>
    %c0_4 = arith.constant 0 : index
    %c0_5 = arith.constant 0 : index
    %c0_6 = arith.constant 0 : index
    %4 = vector.load %arg4[%c0_4, %c0_5, %c0_6] : memref<2x16x32xf32, #tpu.memory_space<vmem>>, vector<1x16x32xf32>
    %5 = vector.shape_cast %4 : vector<1x16x32xf32> to vector<16x32xf32>
    %cst_7 = arith.constant dense<0.000000e+00> : vector<8x32xf32>
    %6 = tpu.matmul %3, %5, %cst_7 {dimension_numbers = #tpu.dot_dimension_numbers<[1], [0], [0], [1], [0, 0, 1, 1], [], []>} : vector<8x16xf32>, vector<16x32xf32>, vector<8x32xf32> -> vector<8x32xf32>
    %c0_8 = arith.constant 0 : index
    %c0_9 = arith.constant 0 : index
    %7 = vector.load %arg3[%c0_8, %c0_9] : memref<8x8xf32, #tpu.memory_space<vmem>>, vector<8x8xf32>
    %cst_10 = arith.constant dense<0.000000e+00> : vector<8x16xf32>
    %8 = tpu.matmul %7, %3, %cst_10 {dimension_numbers = #tpu.dot_dimension_numbers<[1], [0], [0], [1], [0, 0, 1, 1], [], []>} : vector<8x8xf32>, vector<8x16xf32>, vector<8x16xf32> -> vector<8x16xf32>
    %c1 = arith.constant 1 : index
    %c0_11 = arith.constant 0 : index
    %c0_12 = arith.constant 0 : index
    %9 = vector.load %arg4[%c1, %c0_11, %c0_12] : memref<2x16x32xf32, #tpu.memory_space<vmem>>, vector<1x16x32xf32>
    %10 = vector.shape_cast %9 : vector<1x16x32xf32> to vector<16x32xf32>
    %cst_13 = arith.constant dense<0.000000e+00> : vector<8x32xf32>
    %11 = tpu.matmul %8, %10, %cst_13 {dimension_numbers = #tpu.dot_dimension_numbers<[1], [0], [0], [1], [0, 0, 1, 1], [], []>} : vector<8x16xf32>, vector<16x32xf32>, vector<8x32xf32> -> vector<8x32xf32>
    %12 = arith.addf %6, %11 : vector<8x32xf32>
    %cst_14 = arith.constant 0.000000e+00 : f32
    %13 = vector.broadcast %cst_14 : f32 to vector<8x32xf32>
    %14 = arith.maximumf %12, %13 : vector<8x32xf32>
    %c0_15 = arith.constant 0 : index
    %c0_16 = arith.constant 0 : index
    %c0_17 = arith.constant 0 : index
    %15 = vector.load %arg5[%c0_15, %c0_16, %c0_17] : memref<1x8x32xf32, #tpu.memory_space<vmem>>, vector<1x8x32xf32>
    %16 = vector.shape_cast %15 : vector<1x8x32xf32> to vector<8x32xf32>
    %17 = vector.shape_cast %14 : vector<8x32xf32> to vector<1x8x32xf32>
    tpu.vector_store %arg5[%c0_15, %c0_16, %c0_17], %17 {strides = array<i32>} : memref<1x8x32xf32, #tpu.memory_space<vmem>>, vector<1x8x32xf32>,
    return
  }
  func.func @transform_0(%arg0: i32) -> (i32, i32, i32) {
    %c0_i32 = arith.constant 0 : i32
    %c0_i32_0 = arith.constant 0 : i32
    %c0_i32_1 = arith.constant 0 : i32
    return %arg0, %c0_i32, %c0_i32_0 : i32, i32, i32
  }
  func.func @transform_1(%arg0: i32) -> (i32, i32) {
    %c0_i32 = arith.constant 0 : i32
    %c0_i32_0 = arith.constant 0 : i32
    %c0_i32_1 = arith.constant 0 : i32
    return %c0_i32, %c0_i32_0 : i32, i32
  }
  func.func @transform_2(%arg0: i32) -> (i32, i32) {
    %c0_i32 = arith.constant 0 : i32
    %c0_i32_0 = arith.constant 0 : i32
    %c0_i32_1 = arith.constant 0 : i32
    return %c0_i32, %c0_i32_0 : i32, i32
  }
  func.func @transform_3(%arg0: i32) -> (i32, i32, i32) {
    %c0_i32 = arith.constant 0 : i32
    %c0_i32_0 = arith.constant 0 : i32
    %c0_i32_1 = arith.constant 0 : i32
    %c0_i32_2 = arith.constant 0 : i32
    return %c0_i32, %c0_i32_0, %c0_i32_1 : i32, i32, i32
  }
  func.func @transform_4(%arg0: i32) -> (i32, i32, i32) {
    %c0_i32 = arith.constant 0 : i32
    %c0_i32_0 = arith.constant 0 : i32
    %c0_i32_1 = arith.constant 0 : i32
    return %arg0, %c0_i32, %c0_i32_0 : i32, i32, i32
  }
}

</mosaic_0001>

<bundles_post_ra>
// kernel: tpu_custom_call.1
= control target key start
LH: loop header
LB: loop body
LE: loop exit
PB: predicated region body
PF: predicated region fallthrough
CT: control target
= control target key end

     0   :  { %9 = vsyncpa [#allocation3], 0  ;;  %s972_s0 = inlined_call_operand.hbm [shape: f32[2,8,16], index: 0, kind: input, shape index: {}]   ;;  %s973_s1 = inlined_call_operand.hbm [shape: f32[8,8], index: 1, kind: input, shape index: {}]   ;;  %s974_s2 = inlined_call_operand.hbm [shape: f32[8,8], index: 2, kind: input, shape index: {}]   ;;  %s975_s3 = inlined_call_operand.hbm [shape: f32[2,16,32], index: 3, kind: input, shape index: {}]   ;;  %s976_s4 = inlined_call_operand.hbm [shape: f32[2,8,32], index: 4, kind: output, shape index: {}]  }
   0x1   :  { %11 = vsyncpa [#allocation3 + $0x1], 0 }
   0x2   :  { %12 = vsyncpa [#allocation6], 0 }
   0x3   :  { %13 = vsyncpa [#allocation9], 0 }
   0x4   :  { %14 = vsyncpa [#allocation4], 0 }
   0x5   :  { %16 = vsyncpa [#allocation4 + $0x1], 0  ;;  %s808_s15 = smov 0   ;;  %s810_s16 = smov 0  }
   0x6   :  { %s812_s17 = smov 0   ;;  %s814_s18 = smov 0  }
   0x7 LB: > { %s829_s19 = sadd.s32 4294967295, %s776_s18   ;;  %s481_s20 = sadd.s32 4294967294, %s776_s18   ;;  %s776_s18 = sphi %s814_s18, %s987_s18   ;;  %s772_s17 = sphi %s812_s17, %s986_s17   ;;  %s768_s16 = sphi %s810_s16, %s985_s16   ;;  %s764_s15 = sphi %s808_s15, %s984_s15  }
   0x8   : > { %p42_p0 = scmp.ne.s32.totalorder %s768_s16, %s764_s15  ;;  %p43_p1 = scmp.eq.s32.totalorder %s829_s19, 0 }
   0x9   : > { %p129_p2 = scmp.eq.s32.totalorder %s829_s19, 1  ;;  %p135_p3 = scmp.eq.s32.totalorder %s481_s20, 1 }
   0xa   : > { %p838_p4 = por %p43_p1, %p42_p0  ;;  %p482_p5 = scmp.ge.s32.totalorder %s776_s18, 1 }
   0xb   : > { %p843_p6 = por %p135_p3, %p42_p0  ;;  %p142_p7 = scmp.lt.s32.totalorder %s776_s18, 3 }
   0xc   : > { %s154_s25 = sshll.u32 %s973_s1, 4  ;;  %s778_s27 = smov [#allocation5]   ;;  %s155_s25 = int_to_ptr.hbm [resolvable:$true] %s154_s25 }
   0xd   : > { %p851_p8 = pnand %p482_p5, %p142_p7  ;;  %s156_s28 = sshll.u32 %s778_s27, 4  ;;  %s157_s28 = int_to_ptr.vmem [resolvable:$true] %s156_s28 }
   0xe   : > { %s166_s5 = sshll.u32 %s974_s2, 4  ;;  %s177_s9 = sshll.u32 %s975_s3, 4  ;;  %s167_s5 = int_to_ptr.hbm [resolvable:$true] %s166_s5  ;;  %s178_s9 = int_to_ptr.hbm [resolvable:$true] %s177_s9 }
   0xf   : > { %p519_p10 = pneg %p851_p8  ;;  %s779_s10 = smov [#allocation7]  }
  0x10   : > { %s168_s11 = sshll.u32 %s779_s10, 4  ;;  %s780_s12 = smov [#allocation8]   ;;  %s169_s11 = int_to_ptr.vmem [resolvable:$true] %s168_s11 }
  0x11   : > { %p863_p11 = pnand %p519_p10, %p43_p1  ;;  %s179_s13 = sshll.u32 %s780_s12, 4  ;;  %s180_s13 = int_to_ptr.vmem [resolvable:$true] %s179_s13 }
  0x12   : > { %s781_s14 = smov 128   ;;  %s782_s20 = smov 8  }
  0x13   : > { %522 = dma.hbm_to_vmem [thread:$0]  (!%p863_p11), %s155_s25, 128, %s157_s28, [#allocation6]  }
  0x14   : > { %525 = dma.hbm_to_vmem [thread:$0]  (!%p863_p11), %s167_s5, 128, %s169_s11, [#allocation6]  }
  0x15   : > { %528 = dma.hbm_to_vmem [thread:$0]  (!%p863_p11), %s178_s9, 512, %s180_s13, [#allocation9], %s781_s14, %s781_s14, %s782_s20  }
  0x16   : > { %s877_s23 = sadd.s32 1, %s776_s18   ;;  %s29_s25 = sadd.s32 1, %s772_s17 }
  0x17   : > { %s26_s24 = ssub.s32 %s776_s18, %s877_s23  ;;  %p36_p13 = scmp.ne.s32.totalorder %s772_s17, %s768_s16 }
  0x18   : > { %p27_p12 = scmp.eq.s32.totalorder %s26_s24, 0  ;;  %p37_p0 = scmp.eq.s32.totalorder %s776_s18, 0 }
  0x19   : > { %p890_p3 = por %p129_p2, %p36_p13  ;;  %p540_p5 = scmp.lt.s32.totalorder %s776_s18, 2 }
  0x1a   : > { %s886_s27 = scalar_select %p27_p12, %s772_s17, %s29_s25  }
  0x1b   : > { %s193_s29 = sand.u32 1, %s772_s17   ;;  %s488_s30 = sshll.u32 %s776_s18, 3 }
  0x1c   : > { %p38_p7 = por %p37_p0, %p36_p13  ;;  %s487_s5 = sshll.u32 %s193_s29, 3 }
  0x1d   : > { %s201_s8 = scalar_lea.hbm %s972_s0, %s488_s30  ;;  %s197_s10 = scalar_lea.vmem [#allocation2], %s487_s5 }
  0x1e   : > { %s203_s9 = sshll.u32 %s201_s8, 4  ;;  %s205_s11 = sshll.u32 %s197_s10, 4  ;;  %s204_s9 = int_to_ptr.hbm [resolvable:$true] %s203_s9  ;;  %s206_s11 = int_to_ptr.vmem [resolvable:$true] %s205_s11 }
  0x1f   : > { %p900_p10 = pnand %p540_p5, %p38_p7  ;;  %s194_s13 = scalar_lea.sflag [#allocation3], %s193_s29 }
  0x20   : > { %s672_s14 = sshra.s32 %s204_s9, 4  ;;  %s679_s30 = scalar_lea.hbm %s972_s0, 16  ;;  %s673_s14 = int_to_ptr.hbm [resolvable:$true] %s672_s14 }
  0x21   : > { %s674_s20 = scalar_lea.hbm %s673_s14, 8  ;;  %p676_p11 = pneg %p900_p10 }
  0x22   : > { %p675_p2 = scmp.ne.s32.totalorder %s673_s14, %s674_s20  ;;  %p680_p0 = scmp.lt.s32.totalorder %s673_s14, %s972_s0 }
  0x23   : > { %p681_p5 = scmp.lt.s32.totalorder %s679_s30, %s674_s20 }
  0x24   : > { %p677_p12 = pnand %p676_p11, %p675_p2 }
  0x25   : > { %p682_p7 = por %p681_p5, %p680_p0 }
  0x26   : > { %p678_p13 = pneg %p677_p12 }
  0x28   : > { %p683_p9 = pnand %p682_p7, %p678_p13 }
  0x2a   : > { %686 = shalt.err (!%p683_p9)
}
  0x2b   : > { %532 = dma.hbm_to_vmem [thread:$0]  (!%p900_p10), %s204_s9, 128, %s206_s11, %s194_s13  }
  0x2c   : > { %214 = sbr.rel (%p851_p8) target bundleno = 448 (0x1c0), region = 36  ;;  %s917_s29 = sand.u32 (!%p851_p8), 1, %s768_s16  }
  0x2d   : > { %s490_s7 = sshll.u32 (!%p851_p8), %s917_s29, 3  ;;  %s217_s8 = scalar_lea.sflag (!%p851_p8), [#allocation3], %s917_s29 }
  0x2e   : > { %s220_s10 = scalar_lea.vmem (!%p851_p8), [#allocation2], %s490_s7 }
  0x31   : > { %747 = dma.done.wait (%p838_p4), %s217_s8, 128  }
  0x32   : > { %749 = vsyncadd (%p838_p4), %s217_s8, 4294967168 }
  0x33   : > { %751 = dma.done.wait (%p43_p1), [#allocation6], 256  }
  0x34   : > { %753 = vsyncadd (%p43_p1), [#allocation6], 4294967040 }
  0x35   : > { %755 = dma.done.wait (%p43_p1), [#allocation9], 512  }
  0x36   : > { %757 = vsyncadd (%p43_p1), [#allocation9], 4294966784  ;;  %vm263_vm0 = vcmask 64512   ;;  %v261_v0 = vld [vmem:[%s220_s10] sm:$0xff]  ;;  %v262_v1 = vld [vmem:[#allocation5] sm:$0xff]  ;;  %vm316_vm1 = vcmask 130048  }
  0x37   : > { %v288_v2 = vld [vmem:[#allocation8 + $0x8] sm:$0xff]  ;;  %282 = vmatpush.msra.mxu0 %v261_v0  ;;  %v287_v3 = vld [vmem:[#allocation8] sm:$0xff]  ;;  %v315_v4 = vld [vmem:[#allocation8 + $0x18] sm:$0xff]  ;;  %s500_s21 = sshll.u32 %s829_s19, 3  ;;  %s260_s12 = scalar_lea.vmem [#allocation10], %s490_s7  ;;  %vm364_vm2 = vcmask 261120  }
  0x38   : > { %357 = vmatpush.msra.mxu3 %v288_v2  ;;  %495 = vmatmul.msk.f32.vlgmr.msra.gmra.mxu0 %vm263_vm0, %v262_v1  ;;  %v289_v5 = vld [vmem:[#allocation7] sm:$0xff]  ;;  %v314_v7 = vld [vmem:[#allocation8 + $0x10] sm:$0xff]  ;;  %s377_s11 = scalar_lea.hbm %s976_s4, %s500_s21  ;;  %s379_s13 = sshll.u32 %s260_s12, 4  ;;  %s380_s13 = int_to_ptr.vmem [resolvable:$true] %s379_s13 }
  0x39   : > { %334 = vmatpush.msra.mxu2 %v315_v4  ;;  %s381_s14 = sshll.u32 %s377_s11, 4  ;;  %s367_s20 = scalar_lea.sflag [#allocation4], %s917_s29  ;;  %s382_s14 = int_to_ptr.hbm [resolvable:$true] %s381_s14 }
  0x3a   : > { %358 = vmatpush.msra.mxu3 %v287_v3  ;;  %s716_s24 = sshra.s32 %s382_s14, 4  ;;  %s722_s5 = scalar_lea.hbm %s976_s4, 16  ;;  %s717_s24 = int_to_ptr.hbm [resolvable:$true] %s716_s24 }
  0x3b   : > { %335 = vmatpush.msra.mxu2 %v314_v7  ;;  %s718_s19 = scalar_lea.hbm %s717_s24, 8  ;;  %p723_p9 = scmp.lt.s32.totalorder %s717_s24, %s976_s4 }
  0x3c   : > { %p719_p1 = scmp.ne.s32.totalorder %s717_s24, %s718_s19  ;;  %p724_p10 = scmp.lt.s32.totalorder %s722_s5, %s718_s19 }
  0x3e   : > { %p720_p4 = pnand %p719_p1, %p890_p3  ;;  %p725_p2 = por %p724_p10, %p723_p9 }
  0x40   : > { %p721_p8 = pneg %p720_p4 }
  0x42   : > { %p726_p11 = pnand %p725_p2, %p721_p8 }
  0xb5   : > { %v284_v6 = vpop.f32.mrf.mxu0 }
  0xb6   : > { %308 = vmatpush.msra.mxu1 %v284_v6  ;;  %498 = vmatmul.msk.f32.vlgmr.msra.gmra.mxu3 %vm316_vm1, %v284_v6 }
  0xb7   : > { %496 = vmatmul.msk.f32.vlgmr.msra.gmra.mxu1 %vm263_vm0, %v289_v5 }
 0x134   : > { %v310_v8 = vpop.f32.mrf.mxu1 }
 0x135   : > { %497 = vmatmul.msk.f32.vlgmr.msra.gmra.mxu2 %vm316_vm1, %v310_v8 }
 0x139   : > { %v360_v9 = vpop.f32.mrf.mxu3 }
 0x1b8   : > { %v337_v10 = vpop.f32.mrf.mxu2 }
 0x1b9   : > { %v361_v11 = vadd.f32 %v360_v9, %v337_v10 }
 0x1bb   : > { %v363_v12 = vmax.f32 %v361_v11, 0.0 }
 0x1bd   : > { %365 = vst.msk [vmem:[%s260_s12] sm:$0xff] %vm364_vm2, %v363_v12 }
 0x1be   : > { %729 = shalt.err (!%p726_p11)
}
 0x1bf   : > { %517 = dma.vmem_to_hbm [thread:$0]  (%p890_p3), %s380_s13, 128, %s382_s14, %s367_s20  }
 0x1c0 PF: > { %s393_s29 = sand.u32 1, %s764_s15   ;;  %p983_p12 = scmp.ge.s32.totalorder %s776_s18, 2 }
 0x1c1   : > { %s394_s8 = scalar_lea.sflag [#allocation4], %s393_s29 }
 0x1c2   : > { %p534_p13 = pnand %p983_p12, %p843_p6 }
 0x1c4   : > { %p535_p0 = pneg %p534_p13 }
 0x1c6   : > { %759 = dma.done.wait (%p535_p0), %s394_s8, 128  }
 0x1c7   : > { %761 = vsyncadd (%p535_p0), %s394_s8, 4294967168  ;;  %p19_p5 = scmp.ge.s32.totalorder %s877_s23, 4   ;;  %s984_s15 = smov %s768_s16 }
 0x1c8   : > { %s985_s16 = smov %s772_s17  ;;  %s986_s17 = smov %s886_s27 }
 0x1c9   : > { %s987_s18 = smov %s877_s23  ;;  %21 = sbr.rel (!%p19_p5) target bundleno = 7 (0x7), region = 94 }
 0x1ce   :  { %400 = vsyncpa [#allocation3], 1 }
 0x1cf   :  { %402 = vsyncpa [#allocation3 + $0x1], 1 }
 0x1d0   :  { %403 = vsyncpa [#allocation6], 1 }
 0x1d1   :  { %404 = vsyncpa [#allocation9], 1 }
 0x1d2   :  { %405 = vsyncpa [#allocation4], 1 }
 0x1d3   :  { %407 = vsyncpa [#allocation4 + $0x1], 1 }

</bundles_post_ra>
